<compile_context>
chip_gen: v7x
topology: tpu7x:2x2x1
jax: 0.10.0
libtpu: 0.0.40
codegen_flags: <defaults>
</compile_context>

<pallas_src>
import jax
import jax.numpy as jnp
from jax import lax
from jax.experimental import pallas as pl
from jax.experimental.pallas import tpu as pltpu

_EPS = 1e-5                         # PyTorch nn.LayerNorm default
_LANES = 128
_BLOCK_BYTES_TARGET = 2 << 20       # ~2 MiB per data block
_MIN_GRID_STEPS = 8                 # keep pipeline + megacore busy
_VMEM_LIMIT = 32 << 20              # explicit scoped-VMEM budget (ok on v5e/v6e/v7x)
_SMALL_FALLBACK_BYTES = 64 << 10    # tiny problems: plain XLA beats kernel launch
_HUGE_D_BYTES = 12 << 20            # minimal block set must fit under _VMEM_LIMIT


def _ln_packed_kernel(real_ref, imag_ref, params_ref, seg_ref,
                      out_real_ref, out_imag_ref):
    """Lane-dense path: each VMEM row holds k logical rows of width D packed
    along the 128-lane axis. `seg` is a (W, W) block-diagonal matrix with 1/D
    entries, so x @ seg yields each position's segment mean broadcast in place
    (runs on the otherwise-idle MXU)."""
    seg = seg_ref[...]
    p = params_ref[...].astype(jnp.float32)          # (4, W)

    def _ln(x_ref, g, b, o_ref):
        x = x_ref[...].astype(jnp.float32)
        mean = jnp.dot(x, seg, precision=lax.Precision.HIGHEST,
                       preferred_element_type=jnp.float32)
        xc = x - mean
        var = jnp.dot(xc * xc, seg, precision=lax.Precision.HIGHEST,
                      preferred_element_type=jnp.float32)   # biased variance
        inv = lax.rsqrt(var + _EPS)
        o_ref[...] = (xc * inv * g + b).astype(o_ref.dtype)

    _ln(real_ref, p[0:1, :], p[1:2, :], out_real_ref)
    _ln(imag_ref, p[2:3, :], p[3:4, :], out_imag_ref)


def _ln_generic_kernel(real_ref, imag_ref, params_ref,
                       out_real_ref, out_imag_ref):
    """Generic path: one logical row per VMEM row, cross-lane (XLU) reduce."""
    p = params_ref[...].astype(jnp.float32)          # (4, D)

    def _ln(x_ref, g, b, o_ref):
        x = x_ref[...].astype(jnp.float32)
        mean = jnp.mean(x, axis=-1, keepdims=True)
        xc = x - mean
        var = jnp.mean(xc * xc, axis=-1, keepdims=True)     # biased variance
        inv = lax.rsqrt(var + _EPS)
        o_ref[...] = (xc * inv * g + b).astype(o_ref.dtype)

    _ln(real_ref, p[0:1, :], p[1:2, :], out_real_ref)
    _ln(imag_ref, p[2:3, :], p[3:4, :], out_imag_ref)


def _round_up(x, m):
    return ((x + m - 1) // m) * m


def _sublane_multiple(dtype):
    return {4: 8, 2: 16, 1: 32}.get(jnp.dtype(dtype).itemsize, 8)


def _layer_norm_ref(x, g, b, eps=_EPS):
    m = jnp.mean(x, axis=-1, keepdims=True)
    v = jnp.mean((x - m) ** 2, axis=-1, keepdims=True)
    return (x - m) * lax.rsqrt(v + eps) * g + b


def complex_layer_norm(real, imag, gamma_real, beta_real, gamma_imag, beta_imag,
                       *, small_fallback_bytes=_SMALL_FALLBACK_BYTES):
    assert real.shape == imag.shape, "real/imag must have matching shapes"
    orig_shape = real.shape
    D = orig_shape[-1]
    # TODO(synk): only a 1-D normalized_shape (an int, as in the PyTorch module)
    # is supported; multi-dim normalized_shape would need trailing-dim flattening.
    for p in (gamma_real, beta_real, gamma_imag, beta_imag):
        assert p.ndim == 1 and p.shape[0] == D

    itemsize = jnp.dtype(real.dtype).itemsize
    total_in_bytes = 2 * real.size * itemsize

    def _reference():
        out_r = _layer_norm_ref(real.astype(jnp.float32), gamma_real, beta_real)
        out_i = _layer_norm_ref(imag.astype(jnp.float32), gamma_imag, beta_imag)
        return out_r.astype(real.dtype), out_i.astype(imag.dtype)

    # Tiny problems: one grid step of pure launch/DMA overhead -> let XLA fuse.
    if total_in_bytes < small_fallback_bytes:
        return _reference()

    R = real.size // D
    sublane = _sublane_multiple(real.dtype)

    # Lane-dense relabel: (R, D) -> (R//k, k*D), k = 128//D (pure row-major
    # relabel, no data movement), so blocks are 128-lane dense.
    packed = (D < _LANES) and (_LANES % D == 0) and (R % (_LANES // D) == 0)
    if packed:
        k = _LANES // D
        W = k * D                       # == 128
        R_rows = R // k
    else:
        k = 1
        W = D
        R_rows = R

    # Guard: even the smallest legal block set (4 arrays x 2 buffers x one
    # sublane-row block) must fit the scoped-VMEM budget.
    if 4 * 2 * sublane * W * itemsize > _HUGE_D_BYTES:
        # TODO(synk): D-tiled two-pass (sum / sum-of-squares) variant for huge
        # normalized dims; fall back to the XLA reference instead of failing.
        return _reference()

    real2d = real.reshape(R_rows, W)
    imag2d = imag.reshape(R_rows, W)

    # Fuse the 4 affine params into a single (4, W) input (one DMA descriptor,
    # pinned to block (0, 0) so it is only copied once across the grid).
    def _tile(p):
        p = p.astype(jnp.float32)
        return jnp.tile(p, k) if k > 1 else p

    params = jnp.stack(
        [_tile(gamma_real), _tile(beta_real), _tile(gamma_imag), _tile(beta_imag)],
        axis=0)

    # Row-tile: ~2 MiB per data block, but keep >= _MIN_GRID_STEPS grid steps
    # whenever possible so the pipeline overlaps and both v7x TCs get work.
    bytes_per_row = W * itemsize
    tm_target = max(1, _BLOCK_BYTES_TARGET // bytes_per_row)
    if R_rows <= sublane:
        TM = R_rows                     # block == full array dim -> always legal
    else:
        tm_cap = _round_up(pl.cdiv(R_rows, _MIN_GRID_STEPS), sublane)
        TM = min(tm_target, tm_cap)
        TM = max(sublane, (TM // sublane) * sublane)
    grid = (pl.cdiv(R_rows, TM),)

    data_spec = pl.BlockSpec((TM, W), lambda i: (i, 0))
    param_spec = pl.BlockSpec((4, W), lambda i: (0, 0))

    if packed:
        # Block-diagonal averaging matrix: seg[i, j] = 1/D iff lanes i and j
        # fall in the same D-wide segment.
        lane_seg = jnp.arange(W, dtype=jnp.int32) // D
        seg = (lane_seg[:, None] == lane_seg[None, :]).astype(jnp.float32) / float(D)
        kernel = _ln_packed_kernel
        extra_inputs = (seg,)
        extra_specs = [pl.BlockSpec((W, W), lambda i: (0, 0))]
    else:
        kernel = _ln_generic_kernel
        extra_inputs = ()
        extra_specs = []

    out_real2d, out_imag2d = pl.pallas_call(
        kernel,
        out_shape=(
            jax.ShapeDtypeStruct((R_rows, W), real.dtype),
            jax.ShapeDtypeStruct((R_rows, W), imag.dtype),
        ),
        grid_spec=pltpu.PrefetchScalarGridSpec(
            num_scalar_prefetch=0,
            grid=grid,
            in_specs=[data_spec, data_spec, param_spec] + extra_specs,
            out_specs=[data_spec, data_spec],
        ),
        compiler_params=pltpu.CompilerParams(
            dimension_semantics=("parallel",),
            vmem_limit_bytes=_VMEM_LIMIT,
        ),
    )(real2d, imag2d, params, *extra_inputs)

    return out_real2d.reshape(orig_shape), out_imag2d.reshape(orig_shape)


if __name__ == "__main__":
    key = jax.random.PRNGKey(0)

    def make_case(case_key, shape, dtype=jnp.float32):
        D = shape[-1]
        k1, k2, k3, k4, k5, k6 = jax.random.split(case_key, 6)
        real = jax.random.normal(k1, shape, dtype=dtype)
        imag = jax.random.normal(k2, shape, dtype=dtype)
        gr = 1.0 + 0.1 * jax.random.normal(k3, (D,), dtype=jnp.float32)
        br = 0.1 * jax.random.normal(k4, (D,), dtype=jnp.float32)
        gi = 1.0 + 0.1 * jax.random.normal(k5, (D,), dtype=jnp.float32)
        bi = 0.1 * jax.random.normal(k6, (D,), dtype=jnp.float32)
        return real, imag, gr, br, gi, bi

    def check(args, **kwargs):
        real, imag, gr, br, gi, bi = args
        out_r, out_i = complex_layer_norm(real, imag, gr, br, gi, bi, **kwargs)
        jax.block_until_ready((out_r, out_i))
        ref_r = _layer_norm_ref(real.astype(jnp.float32), gr, br).astype(real.dtype)
        ref_i = _layer_norm_ref(imag.astype(jnp.float32), gi, bi).astype(imag.dtype)
        assert out_r.shape == real.shape and out_i.shape == imag.shape
        assert jnp.allclose(out_r, ref_r, atol=1e-4, rtol=1e-4)
        assert jnp.allclose(out_i, ref_i, atol=1e-4, rtol=1e-4)

    keys = jax.random.split(key, 4)

    # Canonical module-sized input (batch=2, seq=8, hidden=32); force the
    # lane-dense Pallas kernel path even though the tensor is tiny.
    check(make_case(keys[0], (2, 8, 32)), small_fallback_bytes=0)
    # Larger case: multi-step grid, lane-dense packing (k=4), default heuristics.
    check(make_case(keys[1], (4, 256, 32)))
    # Generic (non-lane-dense) kernel path: D=96 does not divide 128.
    check(make_case(keys[2], (2, 16, 96)), small_fallback_bytes=0)
    # Tiny-problem fallback (plain XLA path) for API consistency.
    check(make_case(keys[3], (2, 8, 32)))

    print("KERNEL_OK")
</pallas_src>

<mosaic_0001>
module attributes {stable_mosaic.version = 11 : i64} {
  func.func @_ln_packed_kernel(%arg0: i32, %arg1: memref<4x128xf32, #tpu.memory_space<vmem>>, %arg2: memref<4x128xf32, #tpu.memory_space<vmem>>, %arg3: memref<4x128xf32, #tpu.memory_space<vmem>>, %arg4: memref<128x128xf32, #tpu.memory_space<vmem>>, %arg5: memref<4x128xf32, #tpu.memory_space<vmem>>, %arg6: memref<4x128xf32, #tpu.memory_space<vmem>>) attributes {dimension_semantics = [#tpu.dimension_semantics<parallel>], iteration_bounds = array<i64: 1>, scalar_prefetch = 0 : i64, scratch_operands = 0 : i64, tpu.core_type = #tpu.core_type<tc>, window_params = [{transform_indices = @transform_0, window_bounds = array<i64: 4, 128>}, {transform_indices = @transform_1, window_bounds = array<i64: 4, 128>}, {pipeline_mode = #tpu.pipeline_mode<synchronous>, transform_indices = @transform_2, window_bounds = array<i64: 4, 128>}, {pipeline_mode = #tpu.pipeline_mode<synchronous>, transform_indices = @transform_3, window_bounds = array<i64: 128, 128>}, {transform_indices = @transform_4, window_bounds = array<i64: 4, 128>}, {transform_indices = @transform_5, window_bounds = array<i64: 4, 128>}]} {
    %c0 = arith.constant 0 : index
    %c0_0 = arith.constant 0 : index
    %0 = vector.load %arg4[%c0, %c0_0] : memref<128x128xf32, #tpu.memory_space<vmem>>, vector<128x128xf32>
    %c0_1 = arith.constant 0 : index
    %c0_2 = arith.constant 0 : index
    %1 = vector.load %arg3[%c0_1, %c0_2] : memref<4x128xf32, #tpu.memory_space<vmem>>, vector<4x128xf32>
    %2 = vector.extract_strided_slice %1 {offsets = [0, 0], sizes = [1, 128], strides = [1, 1]} : vector<4x128xf32> to vector<1x128xf32>
    %3 = vector.extract_strided_slice %1 {offsets = [1, 0], sizes = [1, 128], strides = [1, 1]} : vector<4x128xf32> to vector<1x128xf32>
    %c0_3 = arith.constant 0 : index
    %c0_4 = arith.constant 0 : index
    %4 = vector.load %arg1[%c0_3, %c0_4] : memref<4x128xf32, #tpu.memory_space<vmem>>, vector<4x128xf32>
    %cst = arith.constant dense<0.000000e+00> : vector<4x128xf32>
    %5 = tpu.matmul %4, %0, %cst {dimension_numbers = #tpu.dot_dimension_numbers<[1], [0], [0], [1], [0, 0, 1, 1], [], []>, precision = #tpu.contract_precision<fp32>} : vector<4x128xf32>, vector<128x128xf32>, vector<4x128xf32> -> vector<4x128xf32>
    %6 = arith.subf %4, %5 : vector<4x128xf32>
    %7 = arith.mulf %6, %6 : vector<4x128xf32>
    %cst_5 = arith.constant dense<0.000000e+00> : vector<4x128xf32>
    %8 = tpu.matmul %7, %0, %cst_5 {dimension_numbers = #tpu.dot_dimension_numbers<[1], [0], [0], [1], [0, 0, 1, 1], [], []>, precision = #tpu.contract_precision<fp32>} : vector<4x128xf32>, vector<128x128xf32>, vector<4x128xf32> -> vector<4x128xf32>
    %cst_6 = arith.constant 9.99999974E-6 : f32
    %9 = vector.broadcast %cst_6 : f32 to vector<4x128xf32>
    %10 = arith.addf %8, %9 : vector<4x128xf32>
    %11 = math.rsqrt %10 : vector<4x128xf32>
    %12 = arith.mulf %6, %11 : vector<4x128xf32>
    %13 = vector.broadcast %2 : vector<1x128xf32> to vector<4x128xf32>
    %14 = arith.mulf %12, %13 : vector<4x128xf32>
    %15 = vector.broadcast %3 : vector<1x128xf32> to vector<4x128xf32>
    %16 = arith.addf %14, %15 : vector<4x128xf32>
    %c0_7 = arith.constant 0 : index
    %c0_8 = arith.constant 0 : index
    %17 = vector.load %arg5[%c0_7, %c0_8] : memref<4x128xf32, #tpu.memory_space<vmem>>, vector<4x128xf32>
    tpu.vector_store %arg5[%c0_7, %c0_8], %16 {strides = array<i32>} : memref<4x128xf32, #tpu.memory_space<vmem>>, vector<4x128xf32>,
    %18 = vector.extract_strided_slice %1 {offsets = [2, 0], sizes = [1, 128], strides = [1, 1]} : vector<4x128xf32> to vector<1x128xf32>
    %19 = vector.extract_strided_slice %1 {offsets = [3, 0], sizes = [1, 128], strides = [1, 1]} : vector<4x128xf32> to vector<1x128xf32>
    %c0_9 = arith.constant 0 : index
    %c0_10 = arith.constant 0 : index
    %20 = vector.load %arg2[%c0_9, %c0_10] : memref<4x128xf32, #tpu.memory_space<vmem>>, vector<4x128xf32>
    %cst_11 = arith.constant dense<0.000000e+00> : vector<4x128xf32>
    %21 = tpu.matmul %20, %0, %cst_11 {dimension_numbers = #tpu.dot_dimension_numbers<[1], [0], [0], [1], [0, 0, 1, 1], [], []>, precision = #tpu.contract_precision<fp32>} : vector<4x128xf32>, vector<128x128xf32>, vector<4x128xf32> -> vector<4x128xf32>
    %22 = arith.subf %20, %21 : vector<4x128xf32>
    %23 = arith.mulf %22, %22 : vector<4x128xf32>
    %cst_12 = arith.constant dense<0.000000e+00> : vector<4x128xf32>
    %24 = tpu.matmul %23, %0, %cst_12 {dimension_numbers = #tpu.dot_dimension_numbers<[1], [0], [0], [1], [0, 0, 1, 1], [], []>, precision = #tpu.contract_precision<fp32>} : vector<4x128xf32>, vector<128x128xf32>, vector<4x128xf32> -> vector<4x128xf32>
    %cst_13 = arith.constant 9.99999974E-6 : f32
    %25 = vector.broadcast %cst_13 : f32 to vector<4x128xf32>
    %26 = arith.addf %24, %25 : vector<4x128xf32>
    %27 = math.rsqrt %26 : vector<4x128xf32>
    %28 = arith.mulf %22, %27 : vector<4x128xf32>
    %29 = vector.broadcast %18 : vector<1x128xf32> to vector<4x128xf32>
    %30 = arith.mulf %28, %29 : vector<4x128xf32>
    %31 = vector.broadcast %19 : vector<1x128xf32> to vector<4x128xf32>
    %32 = arith.addf %30, %31 : vector<4x128xf32>
    %c0_14 = arith.constant 0 : index
    %c0_15 = arith.constant 0 : index
    %33 = vector.load %arg6[%c0_14, %c0_15] : memref<4x128xf32, #tpu.memory_space<vmem>>, vector<4x128xf32>
    tpu.vector_store %arg6[%c0_14, %c0_15], %32 {strides = array<i32>} : memref<4x128xf32, #tpu.memory_space<vmem>>, vector<4x128xf32>,
    return
  }
  func.func @transform_0(%arg0: i32) -> (i32, i32) {
    %c0_i32 = arith.constant 0 : i32
    %c0_i32_0 = arith.constant 0 : i32
    return %arg0, %c0_i32 : i32, i32
  }
  func.func @transform_1(%arg0: i32) -> (i32, i32) {
    %c0_i32 = arith.constant 0 : i32
    %c0_i32_0 = arith.constant 0 : i32
    return %arg0, %c0_i32 : i32, i32
  }
  func.func @transform_2(%arg0: i32) -> (i32, i32) {
    %c0_i32 = arith.constant 0 : i32
    %c0_i32_0 = arith.constant 0 : i32
    %c0_i32_1 = arith.constant 0 : i32
    return %c0_i32, %c0_i32_0 : i32, i32
  }
  func.func @transform_3(%arg0: i32) -> (i32, i32) {
    %c0_i32 = arith.constant 0 : i32
    %c0_i32_0 = arith.constant 0 : i32
    %c0_i32_1 = arith.constant 0 : i32
    return %c0_i32, %c0_i32_0 : i32, i32
  }
  func.func @transform_4(%arg0: i32) -> (i32, i32) {
    %c0_i32 = arith.constant 0 : i32
    %c0_i32_0 = arith.constant 0 : i32
    return %arg0, %c0_i32 : i32, i32
  }
  func.func @transform_5(%arg0: i32) -> (i32, i32) {
    %c0_i32 = arith.constant 0 : i32
    %c0_i32_0 = arith.constant 0 : i32
    return %arg0, %c0_i32 : i32, i32
  }
}

</mosaic_0001>

<bundles_post_ra>
// kernel: tpu_custom_call.1
= control target key start
LH: loop header
LB: loop body
LE: loop exit
PB: predicated region body
PF: predicated region fallthrough
CT: control target
= control target key end

     0   :  { %11 = vsyncpa [#allocation3], 0  ;;  %s5436_s0 = inlined_call_operand.hbm [shape: f32[4,128], index: 0, kind: input, shape index: {}]   ;;  %s5437_s1 = inlined_call_operand.hbm [shape: f32[4,128], index: 1, kind: input, shape index: {}]   ;;  %s5438_s2 = inlined_call_operand.vmem [shape: f32[4,128], index: 2, kind: input, shape index: {}]   ;;  %s5439_s3 = inlined_call_operand.hbm [shape: f32[128,128], index: 3, kind: input, shape index: {}]   ;;  %s5440_s4 = inlined_call_operand.hbm [shape: f32[4,128], index: 4, kind: output, shape index: {0}]   ;;  %s5441_s5 = inlined_call_operand.hbm [shape: f32[4,128], index: 5, kind: output, shape index: {1}]  }
   0x1   :  { %12 = vsyncpa [#allocation6], 0 }
   0x2   :  { %13 = vsyncpa [#allocation4], 0 }
   0x3   :  { %14 = vsyncpa [#allocation10], 0  ;;  %s4699_s18 = smov [#allocation5]   ;;  %s4700_s20 = smov [#allocation2]  }
   0x4   :  { %s31_s19 = sshll.u32 %s4699_s18, 4  ;;  %s21_s21 = sshll.u32 %s4700_s20, 4  ;;  %s32_s19 = int_to_ptr.vmem [resolvable:$true] %s31_s19  ;;  %s22_s21 = int_to_ptr.vmem [resolvable:$true] %s21_s21 }
   0x5   :  { %s4581_s24 = scalar_lea.hbm %s5437_s1, 64 }
   0x6   :  { %p4582_p0 = scmp.ne.s32.totalorder %s5437_s1, %s4581_s24  ;;  %p4585_p1 = scmp.lt.u32.totalorder %s4581_s24, %s5437_s1 }
   0x8   :  { %p4587_p2 = pnand %p4585_p1, %p4582_p0 }
   0xa   :  { %4590 = shalt.err (!%p4587_p2)
}
   0xb   :  { %s4591_s29 = scalar_lea.vmem %s32_s19, 64  ;;  %p4596_p4 = scmp.lt.s32.totalorder %s32_s19, %s32_s19 }
   0xc   :  { %p4592_p3 = scmp.ne.s32.totalorder %s32_s19, %s4591_s29  ;;  %p4597_p5 = scmp.lt.s32.totalorder %s4591_s29, %s4591_s29 }
   0xe   :  { %p4598_p6 = por %p4597_p5, %p4596_p4 }
  0x10   :  { %p4599_p7 = pnand %p4598_p6, %p4592_p3 }
  0x12   :  { %4602 = shalt.err (!%p4599_p7)
}
  0x13   :  { %34 = dma.hbm_to_vmem [thread:$0]  %s5437_s1, 64, %s32_s19, [#allocation6]  }
  0x14   :  { %s4603_s9 = scalar_lea.hbm %s5436_s0, 64 }
  0x15   :  { %p4604_p8 = scmp.ne.s32.totalorder %s5436_s0, %s4603_s9  ;;  %p4607_p9 = scmp.lt.u32.totalorder %s4603_s9, %s5436_s0 }
  0x17   :  { %p4609_p10 = pnand %p4607_p9, %p4604_p8 }
  0x19   :  { %4612 = shalt.err (!%p4609_p10)
}
  0x1a   :  { %s4613_s14 = scalar_lea.vmem %s22_s21, 64  ;;  %p4618_p12 = scmp.lt.s32.totalorder %s22_s21, %s22_s21 }
  0x1b   :  { %p4614_p11 = scmp.ne.s32.totalorder %s22_s21, %s4613_s14  ;;  %p4619_p13 = scmp.lt.s32.totalorder %s4613_s14, %s4613_s14 }
  0x1d   :  { %p4620_p0 = por %p4619_p13, %p4618_p12 }
  0x1f   :  { %p4621_p1 = pnand %p4620_p0, %p4614_p11 }
  0x21   :  { %4624 = shalt.err (!%p4621_p1)
}
  0x22   :  { %24 = dma.hbm_to_vmem [thread:$0]  %s5436_s0, 64, %s22_s21, [#allocation3]  }
  0x23   :  { %s4701_s16 = smov [#allocation7]   ;;  %s4625_s20 = scalar_lea.hbm %s5439_s3, 2048 }
  0x24   :  { %s42_s17 = sshll.u32 %s4701_s16, 4  ;;  %p4626_p2 = scmp.ne.s32.totalorder %s5439_s3, %s4625_s20  ;;  %s43_s17 = int_to_ptr.vmem [resolvable:$true] %s42_s17 }
  0x25   :  { %p4629_p3 = scmp.lt.u32.totalorder %s4625_s20, %s5439_s3 }
  0x27   :  { %p4631_p4 = pnand %p4629_p3, %p4626_p2 }
  0x29   :  { %4634 = shalt.err (!%p4631_p4)
}
  0x2a   :  { %s4635_s26 = scalar_lea.vmem %s43_s17, 2048  ;;  %p4640_p6 = scmp.lt.s32.totalorder %s43_s17, %s43_s17 }
  0x2b   :  { %p4636_p5 = scmp.ne.s32.totalorder %s43_s17, %s4635_s26  ;;  %p4641_p7 = scmp.lt.s32.totalorder %s4635_s26, %s4635_s26 }
  0x2d   :  { %p4642_p8 = por %p4641_p7, %p4640_p6 }
  0x2f   :  { %p4643_p9 = pnand %p4642_p8, %p4636_p5 }
  0x31   :  { %4646 = shalt.err (!%p4643_p9)
}
  0x32   :  { %s4702_s0 = smov 128   ;;  %s4703_s21 = smov 8  }
  0x33   :  { %48 = dma.hbm_to_vmem [thread:$0]  %s5439_s3, 2048, %s43_s17, [#allocation6], %s4702_s0, %s4702_s0, %s4703_s21  }
  0x34   :  { %4691 = dma.done.wait [#allocation3], 64  }
  0x35   :  { %4692 = vsyncadd [#allocation3], 4294967232 }
  0x36   :  { %4693 = dma.done.wait [#allocation6], 2112  }
  0x37   :  { %4694 = vsyncadd [#allocation6], 4294965184  ;;  %v4704_v0 = vmov 0.0|0.0   ;;  %vm4705_vm0 = vmmov 0   ;;  %v4706_v1 = vmov 0.0   ;;  %v58_v2 = vld [vmem:[#allocation7] sm:$0xff] }
  0x38   :  { %3949 = vmatprep.subr.bf16.mxu0 %v4704_v0  ;;  %3141 = vmatprep.mubr.msk.f32.mxu0 %vm4705_vm0, %v4706_v1  ;;  %v59_v3 = vld [vmem:[#allocation7 + $0x8] sm:$0xff]  ;;  %v60_v4 = vld [vmem:[#allocation7 + $0x10] sm:$0xff]  ;;  %v77_v5 = vand.u32 4294901760, %v58_v2  ;;  %v61_v7 = vld [vmem:[#allocation7 + $0x18] sm:$0xff]  ;;  %s4707_s30 = smov [#allocation8]  }
  0x39   :  { %4093 = vmatprep.subr.bf16.mxu1 %v4704_v0  ;;  %3351 = vmatprep.mubr.msk.f32.mxu1 %vm4705_vm0, %v4706_v1  ;;  %v80_v6 = vand.u32 4294901760, %v59_v3  ;;  %v83_v8 = vand.u32 4294901760, %v60_v4  ;;  %v86_v9 = vand.u32 4294901760, %v61_v7  ;;  %v62_v10 = vld [vmem:[#allocation7 + $0x20] sm:$0xff]  ;;  %v63_v11 = vld [vmem:[#allocation7 + $0x28] sm:$0xff]  ;;  %v64_v16 = vld [vmem:[#allocation7 + $0x30] sm:$0xff] }
  0x3a   :  { %v89_v14 = vand.u32 4294901760, %v62_v10  ;;  %v92_v15 = vand.u32 4294901760, %v63_v11  ;;  %v65_v17 = vld [vmem:[#allocation7 + $0x38] sm:$0xff]  ;;  %v95_v19 = vand.u32 4294901760, %v64_v16  ;;  %v66_v21 = vld [vmem:[#allocation7 + $0x40] sm:$0xff]  ;;  %v67_v23 = vld [vmem:[#allocation7 + $0x48] sm:$0xff]  ;;  %v4803_v34 = vsub.f32 %v58_v2, %v77_v5 }
  0x3b   :  { %v4781_v12 = vpack.c.bf16 %v80_v6, %v77_v5  ;;  %v4784_v13 = vpack.c.bf16 %v86_v9, %v83_v8  ;;  %v98_v20 = vand.u32 4294901760, %v65_v17  ;;  %v4792_v22 = vld [vmem:[#allocation2] sm:$0xf]  ;;  %v68_v24 = vld [vmem:[#allocation7 + $0x50] sm:$0xff]  ;;  %v70_v26 = vld [vmem:[#allocation7 + $0x60] sm:$0xff]  ;;  %v101_v27 = vand.u32 4294901760, %v66_v21 }
  0x3c   :  { %v4790_v18 = vpack.c.bf16 %v92_v15, %v89_v14  ;;  %v69_v25 = vld [vmem:[#allocation7 + $0x58] sm:$0xff]  ;;  %v71_v28 = vld [vmem:[#allocation7 + $0x68] sm:$0xff]  ;;  %v72_v29 = vld [vmem:[#allocation7 + $0x70] sm:$0xff]  ;;  %v4798_v31 = vand.u32 4294901760, %v4792_v22  ;;  %v104_v33 = vand.u32 4294901760, %v67_v23  ;;  %v4805_v35 = vsub.f32 %v59_v3, %v80_v6  ;;  %s2677_s6 = sshll.u32 %s4707_s30, 4  ;;  %s2678_s6 = int_to_ptr.vmem [resolvable:$true] %s2677_s6 }
  0x3d   :  { %3951 = vmatpush3.bf16.msra.mxu0 %v4781_v12  ;;  %4095 = vmatpush3.bf16.msra.mxu1 %v4781_v12  ;;  %v73_v30 = vld [vmem:[#allocation7 + $0x78] sm:$0xff]  ;;  %v4801_v32 = vpack.c.bf16 %v98_v20, %v95_v19  ;;  %v107_v36 = vand.u32 4294901760, %v68_v24  ;;  %v110_v37 = vand.u32 4294901760, %v69_v25  ;;  %v113_v38 = vand.u32 4294901760, %v70_v26  ;;  %s4647_s7 = scalar_lea.vmem %s2678_s6, 64  ;;  %p4652_p11 = scmp.lt.s32.totalorder %s2678_s6, %s2678_s6 }
  0x3e   :  { %3952 = vmatprep.subr.bf16.mxu0 %v4704_v0  ;;  %4096 = vmatprep.subr.bf16.mxu1 %v4704_v0  ;;  %v116_v39 = vand.u32 4294901760, %v71_v28  ;;  %v119_v40 = vand.u32 4294901760, %v72_v29  ;;  %v122_v41 = vand.u32 4294901760, %v73_v30  ;;  %v4812_v42 = vsub.f32 %v4792_v22, %v4798_v31  ;;  %p4648_p10 = scmp.ne.s32.totalorder %s2678_s6, %s4647_s7  ;;  %p4653_p12 = scmp.lt.s32.totalorder %s4647_s7, %s4647_s7 }
  0x3f   :  { %v4814_v43 = vsub.f32 %v60_v4, %v83_v8  ;;  %v4817_v44 = vpack.c.bf16 %v104_v33, %v101_v27  ;;  %v170_v45 = vand.u32 4294901760, %v4803_v34  ;;  %v177_v46 = vand.u32 4294901760, %v4805_v35 }
  0x40   :  { %v4821_v47 = vsub.f32 %v61_v7, %v86_v9  ;;  %v4825_v48 = vsub.f32 %v62_v10, %v89_v14  ;;  %v4828_v49 = vpack.c.bf16 %v110_v37, %v107_v36  ;;  %v4830_v50 = vpack.c.bf16 %v116_v39, %v113_v38  ;;  %p4654_p13 = por %p4653_p12, %p4652_p11 }
  0x41   :  { %3954 = vmatpush3.bf16.msra.mxu0 %v4784_v13  ;;  %4098 = vmatpush3.bf16.msra.mxu1 %v4784_v13  ;;  %v4832_v51 = vpack.c.bf16 %v122_v41, %v119_v40  ;;  %v159_v52 = vand.u32 4294901760, %v4812_v42  ;;  %v184_v53 = vand.u32 4294901760, %v4814_v43  ;;  %v4836_v54 = vsub.f32 %v63_v11, %v92_v15 }
  0x42   :  { %3955 = vmatprep.subr.bf16.mxu0 %v4704_v0  ;;  %4099 = vmatprep.subr.bf16.mxu1 %v4704_v0  ;;  %v4838_v55 = vsub.f32 %v64_v16, %v95_v19  ;;  %v171_v56 = vsub.f32 %v4803_v34, %v170_v45  ;;  %v178_v57 = vsub.f32 %v4805_v35, %v177_v46  ;;  %v191_v58 = vand.u32 4294901760, %v4821_v47  ;;  %p4655_p0 = pnand %p4654_p13, %p4648_p10 }
  0x43   :  { %v4844_v59 = vsub.f32 %v65_v17, %v98_v20  ;;  %v198_v60 = vand.u32 4294901760, %v4825_v48  ;;  %v4849_v61 = vsub.f32 %v66_v21, %v101_v27  ;;  %v4851_v62 = vsub.f32 %v67_v23, %v104_v33 }
  0x44   :  { %v4853_v63 = vsub.f32 %v68_v24, %v107_v36  ;;  %v4856_v2 = vsub.f32 %v69_v25, %v110_v37  ;;  %v4858_v3 = vsub.f32 %v70_v26, %v113_v38  ;;  %v4860_v4 = vsub.f32 %v71_v28, %v116_v39 }
  0x45   :  { %3957 = vmatpush3.bf16.msra.mxu0 %v4790_v18  ;;  %4101 = vmatpush3.bf16.msra.mxu1 %v4790_v18  ;;  %v4862_v5 = vsub.f32 %v72_v29, %v119_v40  ;;  %v160_v6 = vsub.f32 %v4812_v42, %v159_v52  ;;  %v185_v7 = vsub.f32 %v4814_v43, %v184_v53  ;;  %v205_v8 = vand.u32 4294901760, %v4836_v54 }
  0x46   :  { %3958 = vmatprep.subr.bf16.mxu0 %v4704_v0  ;;  %4102 = vmatprep.subr.bf16.mxu1 %v4704_v0  ;;  %v4869_v9 = vsub.f32 %v73_v30, %v122_v41  ;;  %v172_v10 = vand.u32 4294901760, %v171_v56  ;;  %v179_v11 = vand.u32 4294901760, %v178_v57  ;;  %v192_v14 = vsub.f32 %v4821_v47, %v191_v58 }
  0x47   :  { %v212_v15 = vand.u32 4294901760, %v4838_v55  ;;  %v219_v16 = vand.u32 4294901760, %v4844_v59  ;;  %v226_v17 = vand.u32 4294901760, %v4849_v61  ;;  %v233_v19 = vand.u32 4294901760, %v4851_v62 }
  0x48   :  { %v240_v20 = vand.u32 4294901760, %v4853_v63  ;;  %v247_v21 = vand.u32 4294901760, %v4856_v2  ;;  %v254_v23 = vand.u32 4294901760, %v4858_v3  ;;  %v261_v24 = vand.u32 4294901760, %v4860_v4 }
  0x49   :  { %3960 = vmatpush3.bf16.msra.mxu0 %v4801_v32  ;;  %4104 = vmatpush3.bf16.msra.mxu1 %v4801_v32  ;;  %v268_v25 = vand.u32 4294901760, %v4862_v5  ;;  %v275_v26 = vand.u32 4294901760, %v4869_v9  ;;  %v4886_v27 = vpack.c.bf16 %v177_v46, %v170_v45  ;;  %v4888_v28 = vpack.c.bf16 %v191_v58, %v184_v53 }
  0x4a   :  { %3961 = vmatprep.subr.bf16.mxu0 %v4704_v0  ;;  %4105 = vmatprep.subr.bf16.mxu1 %v4704_v0  ;;  %v4890_v29 = vpack.c.bf16 %v205_v8, %v198_v60  ;;  %v4893_v30 = vpack.c.bf16 %v219_v16, %v212_v15  ;;  %v4895_v33 = vpack.c.bf16 %v233_v19, %v226_v17  ;;  %v161_v39 = vand.u32 4294901760, %v160_v6 }
  0x4b   :  { %v4897_v36 = vpack.c.bf16 %v247_v21, %v240_v20  ;;  %v4899_v37 = vpack.c.bf16 %v261_v24, %v254_v23  ;;  %v4902_v38 = vpack.c.bf16 %v275_v26, %v268_v25  ;;  %v199_v40 = vsub.f32 %v4825_v48, %v198_v60 }
  0x4c   :  { %v4908_v41 = vpack.c.bf16 %v179_v11, %v172_v10  ;;  %v186_v45 = vand.u32 4294901760, %v185_v7  ;;  %v193_v46 = vand.u32 4294901760, %v192_v14  ;;  %v206_v53 = vsub.f32 %v4836_v54, %v205_v8 }
  0x4d   :  { %3963 = vmatpush3.bf16.msra.mxu0 %v4817_v44  ;;  %4107 = vmatpush3.bf16.msra.mxu1 %v4817_v44  ;;  %v213_v56 = vsub.f32 %v4838_v55, %v212_v15  ;;  %v200_v58 = vand.u32 4294901760, %v199_v40  ;;  %v220_v6 = vsub.f32 %v4844_v59, %v219_v16  ;;  %v227_v11 = vsub.f32 %v4849_v61, %v226_v17 }
  0x4e   :  { %3964 = vmatprep.subr.bf16.mxu0 %v4704_v0  ;;  %4108 = vmatprep.subr.bf16.mxu1 %v4704_v0  ;;  %v4916_v57 = vpack.c.bf16 %v193_v46, %v186_v45  ;;  %v207_v60 = vand.u32 4294901760, %v206_v53  ;;  %v234_v14 = vsub.f32 %v4851_v62, %v233_v19  ;;  %v241_v15 = vsub.f32 %v4853_v63, %v240_v20 }
  0x4f   :  { %v214_v7 = vand.u32 4294901760, %v213_v56  ;;  %v221_v10 = vand.u32 4294901760, %v220_v6  ;;  %v248_v45 = vsub.f32 %v4856_v2, %v247_v21  ;;  %v255_v46 = vsub.f32 %v4858_v3, %v254_v23 }
  0x50   :  { %v4923_v8 = vpack.c.bf16 %v207_v60, %v200_v58  ;;  %v235_v40 = vand.u32 4294901760, %v234_v14  ;;  %v242_v19 = vand.u32 4294901760, %v241_v15  ;;  %v262_v20 = vsub.f32 %v4860_v4, %v261_v24 }
  0x51   :  { %3966 = vmatpush3.bf16.msra.mxu0 %v4828_v49  ;;  %4110 = vmatpush3.bf16.msra.mxu1 %v4828_v49  ;;  %v4930_v16 = vpack.c.bf16 %v221_v10, %v214_v7  ;;  %v249_v53 = vand.u32 4294901760, %v248_v45  ;;  %v269_v56 = vsub.f32 %v4862_v5, %v268_v25  ;;  %v256_v21 = vand.u32 4294901760, %v255_v46 }
  0x52   :  { %3967 = vmatprep.subr.bf16.mxu0 %v4704_v0  ;;  %4111 = vmatprep.subr.bf16.mxu1 %v4704_v0  ;;  %v263_v60 = vand.u32 4294901760, %v262_v20  ;;  %v276_v23 = vsub.f32 %v4869_v9, %v275_v26  ;;  %v4957_v26 = vpack.c.bf16 %v4805_v35, %v4803_v34  ;;  %v4964_v10 = vpack.c.bf16 %v4821_v47, %v4814_v43 }
  0x53   :  { %v4942_v58 = vpack.c.bf16 %v249_v53, %v242_v19  ;;  %v270_v7 = vand.u32 4294901760, %v269_v56  ;;  %v4972_v34 = vpack.c.bf16 %v4836_v54, %v4825_v48  ;;  %v4978_v35 = vpack.c.bf16 %v4844_v59, %v4838_v55 }
  0x54   :  { %v4947_v6 = vpack.c.bf16 %v263_v60, %v256_v21  ;;  %v277_v24 = vand.u32 4294901760, %v276_v23  ;;  %v4984_v43 = vpack.c.bf16 %v4851_v62, %v4849_v61  ;;  %v4990_v47 = vpack.c.bf16 %v4856_v2, %v4853_v63 }
  0x55   :  { %3969 = vmatpush3.bf16.msra.mxu0 %v4830_v50  ;;  %4113 = vmatpush3.bf16.msra.mxu1 %v4830_v50  ;;  %v4996_v48 = vpack.c.bf16 %v4860_v4, %v4858_v3  ;;  %v5002_v54 = vpack.c.bf16 %v4869_v9, %v4862_v5 }
  0x56   :  { %3970 = vmatprep.subr.bf16.mxu0 %v4704_v0  ;;  %4114 = vmatprep.subr.bf16.mxu1 %v4704_v0  ;;  %v4951_v25 = vpack.c.bf16 %v277_v24, %v270_v7 }
  0x59   :  { %3972 = vmatpush3.bf16.msra.mxu0 %v4832_v51  ;;  %4116 = vmatpush3.bf16.msra.mxu1 %v4832_v51 }
  0x5a   :  { %3973 = vmatprep.subr.bf16.mxu0 %v4704_v0  ;;  %4117 = vmatprep.subr.bf16.mxu1 %v4704_v0 }
  0x5c   :  { %3142 = vmatmul.mubr.f32.vlgmr.msra.gmra.mrb[0].mxu0 %v161_v39  ;;  %v228_v39 = vand.u32 4294901760, %v227_v11 }
  0x5d   :  { %3975 = vmatpush3.bf16.msra.mxu0 %v4908_v41  ;;  %3176 = vmatprep.mubr.msk.f32.mxu0 %vm4705_vm0, %v4706_v1 }
  0x5e   :  { %3976 = vmatprep.subr.bf16.mxu0 %v4704_v0  ;;  %v4936_v17 = vpack.c.bf16 %v235_v40, %v228_v39 }
  0x61   :  { %3978 = vmatpush3.bf16.msra.mxu0 %v4916_v57 }
  0x62   :  { %3979 = vmatprep.subr.bf16.mxu0 %v4704_v0 }
  0x65   :  { %3981 = vmatpush3.bf16.msra.mxu0 %v4923_v8 }
  0x66   :  { %3982 = vmatprep.subr.bf16.mxu0 %v4704_v0 }
  0x69   :  { %3984 = vmatpush3.bf16.msra.mxu0 %v4930_v16 }
  0x6a   :  { %3985 = vmatprep.subr.bf16.mxu0 %v4704_v0 }
  0x6d   :  { %3987 = vmatpush3.bf16.msra.mxu0 %v4936_v17 }
  0x6e   :  { %3988 = vmatprep.subr.bf16.mxu0 %v4704_v0 }
  0x71   :  { %3990 = vmatpush3.bf16.msra.mxu0 %v4942_v58 }
  0x72   :  { %3991 = vmatprep.subr.bf16.mxu0 %v4704_v0 }
  0x75   :  { %3993 = vmatpush3.bf16.msra.mxu0 %v4947_v6 }
  0x76   :  { %3994 = vmatprep.subr.bf16.mxu0 %v4704_v0 }
  0x79   :  { %3996 = vmatpush3.bf16.msra.mxu0 %v4951_v25 }
  0x7a   :  { %3997 = vmatprep.subr.bf16.mxu0 %v4704_v0 }
  0x7c   :  { %3177 = vmatmul.mubr.f32.vlgmr.msra.gmra.mrb[0].mxu0 %v4798_v31 }
  0x7d   :  { %3999 = vmatpush3.bf16.msra.mxu0 %v4957_v26  ;;  %3211 = vmatprep.mubr.msk.f32.mxu0 %vm4705_vm0, %v4706_v1 }
  0x7e   :  { %4000 = vmatprep.subr.bf16.mxu0 %v4704_v0 }
  0x81   :  { %4002 = vmatpush3.bf16.msra.mxu0 %v4964_v10 }
  0x82   :  { %4003 = vmatprep.subr.bf16.mxu0 %v4704_v0 }
  0x85   :  { %4005 = vmatpush3.bf16.msra.mxu0 %v4972_v34 }
  0x86   :  { %4006 = vmatprep.subr.bf16.mxu0 %v4704_v0 }
  0x89   :  { %4008 = vmatpush3.bf16.msra.mxu0 %v4978_v35 }
  0x8a   :  { %4009 = vmatprep.subr.bf16.mxu0 %v4704_v0 }
  0x8d   :  { %4011 = vmatpush3.bf16.msra.mxu0 %v4984_v43 }
  0x8e   :  { %4012 = vmatprep.subr.bf16.mxu0 %v4704_v0 }
  0x91   :  { %4014 = vmatpush3.bf16.msra.mxu0 %v4990_v47 }
  0x92   :  { %4015 = vmatprep.subr.bf16.mxu0 %v4704_v0 }
  0x95   :  { %4017 = vmatpush3.bf16.msra.mxu0 %v4996_v48 }
  0x96   :  { %4018 = vmatprep.subr.bf16.mxu0 %v4704_v0 }
  0x99   :  { %4020 = vmatpush3.bf16.msra.mxu0 %v5002_v54 }
  0x9a   :  { %4021 = vmatprep.subr.bf16.mxu0 %v4704_v0 }
  0x9c   :  { %3212 = vmatmul.mubr.f32.vlgmr.msra.gmra.mrb[0].mxu0 %v4812_v42  ;;  %v5073_v42 = vld [vmem:[#allocation5] sm:$0xf] }
  0x9d   :  { %4023 = vmatpush3.bf16.msra.mxu0 %v4781_v12  ;;  %3246 = vmatprep.mubr.msk.f32.mxu0 %vm4705_vm0, %v4706_v1 }
  0x9e   :  { %4024 = vmatprep.subr.bf16.mxu0 %v4704_v0 }
  0xa1   :  { %4026 = vmatpush3.bf16.msra.mxu0 %v4784_v13 }
  0xa2   :  { %4027 = vmatprep.subr.bf16.mxu0 %v4704_v0 }
  0xa5   :  { %4029 = vmatpush3.bf16.msra.mxu0 %v4790_v18 }
  0xa6   :  { %4030 = vmatprep.subr.bf16.mxu0 %v4704_v0 }
  0xa9   :  { %4032 = vmatpush3.bf16.msra.mxu0 %v4801_v32 }
  0xaa   :  { %4033 = vmatprep.subr.bf16.mxu0 %v4704_v0 }
  0xad   :  { %4035 = vmatpush3.bf16.msra.mxu0 %v4817_v44 }
  0xae   :  { %4036 = vmatprep.subr.bf16.mxu0 %v4704_v0 }
  0xb1   :  { %4038 = vmatpush3.bf16.msra.mxu0 %v4828_v49 }
  0xb2   :  { %4039 = vmatprep.subr.bf16.mxu0 %v4704_v0 }
  0xb5   :  { %4041 = vmatpush3.bf16.msra.mxu0 %v4830_v50 }
  0xb6   :  { %4042 = vmatprep.subr.bf16.mxu0 %v4704_v0 }
  0xb9   :  { %4044 = vmatpush3.bf16.msra.mxu0 %v4832_v51 }
  0xba   :  { %4045 = vmatprep.subr.bf16.mxu0 %v4704_v0 }
  0xbc   :  { %3247 = vmatmul.mubr.f32.vlgmr.msra.gmra.mrb[0].mxu0 %v159_v52  ;;  %v5077_v52 = vand.u32 4294901760, %v5073_v42 }
  0xbd   :  { %4047 = vmatpush3.bf16.msra.mxu0 %v4886_v27  ;;  %3281 = vmatprep.mubr.msk.f32.mxu0 %vm4705_vm0, %v4706_v1 }
  0xbe   :  { %4048 = vmatprep.subr.bf16.mxu0 %v4704_v0 }
  0xc1   :  { %4050 = vmatpush3.bf16.msra.mxu0 %v4888_v28 }
  0xc2   :  { %4051 = vmatprep.subr.bf16.mxu0 %v4704_v0 }
  0xc5   :  { %4053 = vmatpush3.bf16.msra.mxu0 %v4890_v29 }
  0xc6   :  { %4054 = vmatprep.subr.bf16.mxu0 %v4704_v0 }
  0xc9   :  { %4056 = vmatpush3.bf16.msra.mxu0 %v4893_v30 }
  0xca   :  { %4057 = vmatprep.subr.bf16.mxu0 %v4704_v0 }
  0xcd   :  { %4059 = vmatpush3.bf16.msra.mxu0 %v4895_v33 }
  0xce   :  { %4060 = vmatprep.subr.bf16.mxu0 %v4704_v0 }
  0xd1   :  { %4062 = vmatpush3.bf16.msra.mxu0 %v4897_v36 }
  0xd2   :  { %4063 = vmatprep.subr.bf16.mxu0 %v4704_v0 }
  0xd5   :  { %4065 = vmatpush3.bf16.msra.mxu0 %v4899_v37 }
  0xd6   :  { %4066 = vmatprep.subr.bf16.mxu0 %v4704_v0 }
  0xd9   :  { %4068 = vmatpush3.bf16.msra.mxu0 %v4902_v38 }
  0xda   :  { %4069 = vmatprep.subr.bf16.mxu0 %v4704_v0 }
  0xdc   :  { %3282 = vmatmul.mubr.f32.vlgmr.msra.gmra.mrb[0].mxu0 %v4798_v31 }
  0xdd   :  { %4071 = vmatpush3.bf16.msra.mxu0 %v4781_v12  ;;  %3316 = vmatprep.mubr.msk.f32.mxu0 %vm4705_vm0, %v4706_v1 }
  0xde   :  { %4072 = vmatprep.subr.bf16.mxu0 %v4704_v0 }
  0xe1   :  { %4074 = vmatpush3.bf16.msra.mxu0 %v4784_v13 }
  0xe2   :  { %4075 = vmatprep.subr.bf16.mxu0 %v4704_v0 }
  0xe5   :  { %4077 = vmatpush3.bf16.msra.mxu0 %v4790_v18 }
  0xe6   :  { %4078 = vmatprep.subr.bf16.mxu0 %v4704_v0 }
  0xe9   :  { %4080 = vmatpush3.bf16.msra.mxu0 %v4801_v32 }
  0xea   :  { %4081 = vmatprep.subr.bf16.mxu0 %v4704_v0 }
  0xed   :  { %4083 = vmatpush3.bf16.msra.mxu0 %v4817_v44 }
  0xee   :  { %4084 = vmatprep.subr.bf16.mxu0 %v4704_v0 }
  0xf1   :  { %4086 = vmatpush3.bf16.msra.mxu0 %v4828_v49 }
  0xf2   :  { %4087 = vmatprep.subr.bf16.mxu0 %v4704_v0 }
  0xf5   :  { %4089 = vmatpush3.bf16.msra.mxu0 %v4830_v50 }
  0xf6   :  { %4090 = vmatprep.subr.bf16.mxu0 %v4704_v0 }
  0xf9   :  { %4092 = vmatpush3.bf16.msra.mxu0 %v4832_v51 }
  0xfa   :  { %4237 = vmatprep.subr.bf16.mxu0 %v4704_v0 }
  0xfc   :  { %3317 = vmatmul.mubr.f32.vlgmr.msra.gmra.mrb[0].mxu0 %v4798_v31  ;;  %v5083_v31 = vsub.f32 %v5073_v42, %v5077_v52 }
  0xfd   :  { %4239 = vmatpush3.bf16.msra.mxu0 %v4781_v12  ;;  %3561 = vmatprep.mubr.msk.f32.mxu0 %vm4705_vm0, %v4706_v1 }
  0xfe   :  { %4240 = vmatprep.subr.bf16.mxu0 %v4704_v0  ;;  %v1457_v55 = vand.u32 4294901760, %v5083_v31 }
 0x100   :  { %v1458_v59 = vsub.f32 %v5083_v31, %v1457_v55 }
 0x101   :  { %4242 = vmatpush3.bf16.msra.mxu0 %v4784_v13 }
 0x102   :  { %4243 = vmatprep.subr.bf16.mxu0 %v4704_v0  ;;  %v1459_v61 = vand.u32 4294901760, %v1458_v59 }
 0x105   :  { %4245 = vmatpush3.bf16.msra.mxu0 %v4790_v18 }
 0x106   :  { %4246 = vmatprep.subr.bf16.mxu0 %v4704_v0 }
 0x109   :  { %4248 = vmatpush3.bf16.msra.mxu0 %v4801_v32 }
 0x10a   :  { %4249 = vmatprep.subr.bf16.mxu0 %v4704_v0 }
 0x10d   :  { %4251 = vmatpush3.bf16.msra.mxu0 %v4817_v44 }
 0x10e   :  { %4252 = vmatprep.subr.bf16.mxu0 %v4704_v0 }
 0x111   :  { %4254 = vmatpush3.bf16.msra.mxu0 %v4828_v49 }
 0x112   :  { %4255 = vmatprep.subr.bf16.mxu0 %v4704_v0 }
 0x115   :  { %4257 = vmatpush3.bf16.msra.mxu0 %v4830_v50 }
 0x116   :  { %4258 = vmatprep.subr.bf16.mxu0 %v4704_v0 }
 0x119   :  { %4260 = vmatpush3.bf16.msra.mxu0 %v4832_v51 }
 0x11a   :  { %4261 = vmatprep.subr.bf16.mxu0 %v4704_v0 }
 0x11c   :  { %3562 = vmatmul.mubr.f32.vlgmr.msra.gmra.mrb[2].mxu0 %v1459_v61 }
 0x11d   :  { %4263 = vmatpush3.bf16.msra.mxu0 %v4908_v41  ;;  %3596 = vmatprep.mubr.msk.f32.mxu0 %vm4705_vm0, %v4706_v1 }
 0x11e   :  { %4264 = vmatprep.subr.bf16.mxu0 %v4704_v0 }
 0x121   :  { %4266 = vmatpush3.bf16.msra.mxu0 %v4916_v57 }
 0x122   :  { %4267 = vmatprep.subr.bf16.mxu0 %v4704_v0 }
 0x125   :  { %4269 = vmatpush3.bf16.msra.mxu0 %v4923_v8 }
 0x126   :  { %4270 = vmatprep.subr.bf16.mxu0 %v4704_v0 }
 0x129   :  { %4272 = vmatpush3.bf16.msra.mxu0 %v4930_v16 }
 0x12a   :  { %4273 = vmatprep.subr.bf16.mxu0 %v4704_v0 }
 0x12d   :  { %4275 = vmatpush3.bf16.msra.mxu0 %v4936_v17 }
 0x12e   :  { %4276 = vmatprep.subr.bf16.mxu0 %v4704_v0 }
 0x131   :  { %4278 = vmatpush3.bf16.msra.mxu0 %v4942_v58 }
 0x132   :  { %4279 = vmatprep.subr.bf16.mxu0 %v4704_v0 }
 0x135   :  { %4281 = vmatpush3.bf16.msra.mxu0 %v4947_v6 }
 0x136   :  { %4282 = vmatprep.subr.bf16.mxu0 %v4704_v0 }
 0x139   :  { %4284 = vmatpush3.bf16.msra.mxu0 %v4951_v25 }
 0x13a   :  { %4285 = vmatprep.subr.bf16.mxu0 %v4704_v0 }
 0x13c   :  { %3597 = vmatmul.mubr.f32.vlgmr.msra.gmra.mrb[2].mxu0 %v5077_v52 }
 0x13d   :  { %4287 = vmatpush3.bf16.msra.mxu0 %v4957_v26  ;;  %3631 = vmatprep.mubr.msk.f32.mxu0 %vm4705_vm0, %v4706_v1 }
 0x13e   :  { %4288 = vmatprep.subr.bf16.mxu0 %v4704_v0 }
 0x141   :  { %4290 = vmatpush3.bf16.msra.mxu0 %v4964_v10 }
 0x142   :  { %4291 = vmatprep.subr.bf16.mxu0 %v4704_v0 }
 0x145   :  { %4293 = vmatpush3.bf16.msra.mxu0 %v4972_v34 }
 0x146   :  { %4294 = vmatprep.subr.bf16.mxu0 %v4704_v0 }
 0x149   :  { %4296 = vmatpush3.bf16.msra.mxu0 %v4978_v35 }
 0x14a   :  { %4297 = vmatprep.subr.bf16.mxu0 %v4704_v0 }
 0x14d   :  { %4299 = vmatpush3.bf16.msra.mxu0 %v4984_v43 }
 0x14e   :  { %4300 = vmatprep.subr.bf16.mxu0 %v4704_v0 }
 0x151   :  { %4302 = vmatpush3.bf16.msra.mxu0 %v4990_v47 }
 0x152   :  { %4303 = vmatprep.subr.bf16.mxu0 %v4704_v0 }
 0x155   :  { %4305 = vmatpush3.bf16.msra.mxu0 %v4996_v48 }
 0x156   :  { %4306 = vmatprep.subr.bf16.mxu0 %v4704_v0 }
 0x159   :  { %4308 = vmatpush3.bf16.msra.mxu0 %v5002_v54 }
 0x15a   :  { %4309 = vmatprep.subr.bf16.mxu0 %v4704_v0 }
 0x15c   :  { %3632 = vmatmul.mubr.f32.vlgmr.msra.gmra.mrb[2].mxu0 %v5083_v31 }
 0x15d   :  { %4311 = vmatpush3.bf16.msra.mxu0 %v4781_v12  ;;  %3666 = vmatprep.mubr.msk.f32.mxu0 %vm4705_vm0, %v4706_v1 }
 0x15e   :  { %4312 = vmatprep.subr.bf16.mxu0 %v4704_v0 }
 0x161   :  { %4314 = vmatpush3.bf16.msra.mxu0 %v4784_v13 }
 0x162   :  { %4315 = vmatprep.subr.bf16.mxu0 %v4704_v0 }
 0x165   :  { %4317 = vmatpush3.bf16.msra.mxu0 %v4790_v18 }
 0x166   :  { %4318 = vmatprep.subr.bf16.mxu0 %v4704_v0 }
 0x169   :  { %4320 = vmatpush3.bf16.msra.mxu0 %v4801_v32 }
 0x16a   :  { %4321 = vmatprep.subr.bf16.mxu0 %v4704_v0 }
 0x16d   :  { %4323 = vmatpush3.bf16.msra.mxu0 %v4817_v44 }
 0x16e   :  { %4324 = vmatprep.subr.bf16.mxu0 %v4704_v0 }
 0x171   :  { %4326 = vmatpush3.bf16.msra.mxu0 %v4828_v49 }
 0x172   :  { %4327 = vmatprep.subr.bf16.mxu0 %v4704_v0 }
 0x175   :  { %4329 = vmatpush3.bf16.msra.mxu0 %v4830_v50 }
 0x176   :  { %4330 = vmatprep.subr.bf16.mxu0 %v4704_v0 }
 0x179   :  { %4332 = vmatpush3.bf16.msra.mxu0 %v4832_v51 }
 0x17a   :  { %4333 = vmatprep.subr.bf16.mxu0 %v4704_v0 }
 0x17c   :  { %3667 = vmatmul.mubr.f32.vlgmr.msra.gmra.mrb[2].mxu0 %v1457_v55 }
 0x17d   :  { %4335 = vmatpush3.bf16.msra.mxu0 %v4886_v27  ;;  %3701 = vmatprep.mubr.msk.f32.mxu0 %vm4705_vm0, %v4706_v1 }
 0x17e   :  { %4336 = vmatprep.subr.bf16.mxu0 %v4704_v0 }
 0x181   :  { %4338 = vmatpush3.bf16.msra.mxu0 %v4888_v28 }
 0x182   :  { %4339 = vmatprep.subr.bf16.mxu0 %v4704_v0 }
 0x185   :  { %4341 = vmatpush3.bf16.msra.mxu0 %v4890_v29 }
 0x186   :  { %4342 = vmatprep.subr.bf16.mxu0 %v4704_v0 }
 0x189   :  { %4344 = vmatpush3.bf16.msra.mxu0 %v4893_v30 }
 0x18a   :  { %4345 = vmatprep.subr.bf16.mxu0 %v4704_v0 }
 0x18d   :  { %4347 = vmatpush3.bf16.msra.mxu0 %v4895_v33 }
 0x18e   :  { %4348 = vmatprep.subr.bf16.mxu0 %v4704_v0 }
 0x191   :  { %4350 = vmatpush3.bf16.msra.mxu0 %v4897_v36 }
 0x192   :  { %4351 = vmatprep.subr.bf16.mxu0 %v4704_v0 }
 0x195   :  { %4353 = vmatpush3.bf16.msra.mxu0 %v4899_v37 }
 0x196   :  { %4354 = vmatprep.subr.bf16.mxu0 %v4704_v0 }
 0x199   :  { %4356 = vmatpush3.bf16.msra.mxu0 %v4902_v38 }
 0x19a   :  { %4357 = vmatprep.subr.bf16.mxu0 %v4704_v0 }
 0x19c   :  { %3702 = vmatmul.mubr.f32.vlgmr.msra.gmra.mrb[2].mxu0 %v5077_v52 }
 0x19d   :  { %4359 = vmatpush3.bf16.msra.mxu0 %v4781_v12  ;;  %3736 = vmatprep.mubr.msk.f32.mxu0 %vm4705_vm0, %v4706_v1 }
 0x19e   :  { %4360 = vmatprep.subr.bf16.mxu0 %v4704_v0 }
 0x1a1   :  { %4362 = vmatpush3.bf16.msra.mxu0 %v4784_v13 }
 0x1a2   :  { %4363 = vmatprep.subr.bf16.mxu0 %v4704_v0 }
 0x1a5   :  { %4365 = vmatpush3.bf16.msra.mxu0 %v4790_v18 }
 0x1a6   :  { %4366 = vmatprep.subr.bf16.mxu0 %v4704_v0 }
 0x1a9   :  { %4368 = vmatpush3.bf16.msra.mxu0 %v4801_v32 }
 0x1aa   :  { %4369 = vmatprep.subr.bf16.mxu0 %v4704_v0 }
 0x1ad   :  { %4371 = vmatpush3.bf16.msra.mxu0 %v4817_v44 }
 0x1ae   :  { %4372 = vmatprep.subr.bf16.mxu0 %v4704_v0 }
 0x1b1   :  { %4374 = vmatpush3.bf16.msra.mxu0 %v4828_v49 }
 0x1b2   :  { %4375 = vmatprep.subr.bf16.mxu0 %v4704_v0 }
 0x1b5   :  { %4377 = vmatpush3.bf16.msra.mxu0 %v4830_v50 }
 0x1b6   :  { %4378 = vmatprep.subr.bf16.mxu0 %v4704_v0 }
 0x1b9   :  { %4380 = vmatpush3.bf16.msra.mxu0 %v4832_v51 }
 0x1bc   :  { %3737 = vmatmul.mubr.f32.vlgmr.msra.gmra.mrb[2].mxu0 %v5077_v52 }
 0x1cf   :  { %v713_v62 = vpop.f32.mrb[0].mxu0 }
 0x1d0   :  { %v5189_v63 = vsub.f32 %v4792_v22, %v713_v62  ;;  %v3318_v2 = vpop.f32.mrb[1].mxu0 }
 0x1d2   :  { %v718_v3 = vmul.f32 %v5189_v63, %v5189_v63 }
 0x1d4   :  { %v5193_v4 = vand.u32 4294901760, %v718_v3 }
 0x1d6   :  { %v801_v5 = vsub.f32 %v718_v3, %v5193_v4 }
 0x1d8   :  { %v802_v9 = vand.u32 4294901760, %v801_v5 }
 0x1da   :  { %v803_v11 = vsub.f32 %v801_v5, %v802_v9 }
 0x1dc   :  { %v804_v14 = vand.u32 4294901760, %v803_v11 }
 0x1de   :  { %3352 = vmatmul.mubr.f32.vlgmr.msra.gmra.mrb[0].mxu1 %v804_v14 }
 0x1df   :  { %4119 = vmatpush3.bf16.msra.mxu1 %v4908_v41  ;;  %3386 = vmatprep.mubr.msk.f32.mxu1 %vm4705_vm0, %v4706_v1 }
 0x1e0   :  { %4120 = vmatprep.subr.bf16.mxu1 %v4704_v0 }
 0x1e3   :  { %4122 = vmatpush3.bf16.msra.mxu1 %v4916_v57 }
 0x1e4   :  { %4123 = vmatprep.subr.bf16.mxu1 %v4704_v0 }
 0x1e7   :  { %4125 = vmatpush3.bf16.msra.mxu1 %v4923_v8 }
 0x1e8   :  { %4126 = vmatprep.subr.bf16.mxu1 %v4704_v0 }
 0x1eb   :  { %4128 = vmatpush3.bf16.msra.mxu1 %v4930_v16 }
 0x1ec   :  { %4129 = vmatprep.subr.bf16.mxu1 %v4704_v0 }
 0x1ef   :  { %4131 = vmatpush3.bf16.msra.mxu1 %v4936_v17 }
 0x1f0   :  { %4132 = vmatprep.subr.bf16.mxu1 %v4704_v0 }
 0x1f3   :  { %4134 = vmatpush3.bf16.msra.mxu1 %v4942_v58 }
 0x1f4   :  { %4135 = vmatprep.subr.bf16.mxu1 %v4704_v0 }
 0x1f7   :  { %4137 = vmatpush3.bf16.msra.mxu1 %v4947_v6 }
 0x1f8   :  { %4138 = vmatprep.subr.bf16.mxu1 %v4704_v0 }
 0x1fb   :  { %4140 = vmatpush3.bf16.msra.mxu1 %v4951_v25 }
 0x1fc   :  { %4141 = vmatprep.subr.bf16.mxu1 %v4704_v0 }
 0x1fe   :  { %3387 = vmatmul.mubr.f32.vlgmr.msra.gmra.mrb[0].mxu1 %v5193_v4 }
 0x1ff   :  { %4143 = vmatpush3.bf16.msra.mxu1 %v4957_v26  ;;  %3421 = vmatprep.mubr.msk.f32.mxu1 %vm4705_vm0, %v4706_v1 }
 0x200   :  { %4144 = vmatprep.subr.bf16.mxu1 %v4704_v0 }
 0x203   :  { %4146 = vmatpush3.bf16.msra.mxu1 %v4964_v10 }
 0x204   :  { %4147 = vmatprep.subr.bf16.mxu1 %v4704_v0 }
 0x207   :  { %4149 = vmatpush3.bf16.msra.mxu1 %v4972_v34 }
 0x208   :  { %4150 = vmatprep.subr.bf16.mxu1 %v4704_v0 }
 0x20b   :  { %4152 = vmatpush3.bf16.msra.mxu1 %v4978_v35 }
 0x20c   :  { %4153 = vmatprep.subr.bf16.mxu1 %v4704_v0 }
 0x20f   :  { %4155 = vmatpush3.bf16.msra.mxu1 %v4984_v43 }
 0x210   :  { %4156 = vmatprep.subr.bf16.mxu1 %v4704_v0 }
 0x213   :  { %4158 = vmatpush3.bf16.msra.mxu1 %v4990_v47 }
 0x214   :  { %4159 = vmatprep.subr.bf16.mxu1 %v4704_v0 }
 0x217   :  { %4161 = vmatpush3.bf16.msra.mxu1 %v4996_v48 }
 0x218   :  { %4162 = vmatprep.subr.bf16.mxu1 %v4704_v0 }
 0x21b   :  { %4164 = vmatpush3.bf16.msra.mxu1 %v5002_v54 }
 0x21c   :  { %4165 = vmatprep.subr.bf16.mxu1 %v4704_v0 }
 0x21e   :  { %3422 = vmatmul.mubr.f32.vlgmr.msra.gmra.mrb[0].mxu1 %v801_v5 }
 0x21f   :  { %4167 = vmatpush3.bf16.msra.mxu1 %v4781_v12  ;;  %3456 = vmatprep.mubr.msk.f32.mxu1 %vm4705_vm0, %v4706_v1 }
 0x220   :  { %4168 = vmatprep.subr.bf16.mxu1 %v4704_v0 }
 0x223   :  { %4170 = vmatpush3.bf16.msra.mxu1 %v4784_v13 }
 0x224   :  { %4171 = vmatprep.subr.bf16.mxu1 %v4704_v0 }
 0x227   :  { %4173 = vmatpush3.bf16.msra.mxu1 %v4790_v18 }
 0x228   :  { %4174 = vmatprep.subr.bf16.mxu1 %v4704_v0 }
 0x22b   :  { %4176 = vmatpush3.bf16.msra.mxu1 %v4801_v32 }
 0x22c   :  { %4177 = vmatprep.subr.bf16.mxu1 %v4704_v0 }
 0x22f   :  { %4179 = vmatpush3.bf16.msra.mxu1 %v4817_v44 }
 0x230   :  { %4180 = vmatprep.subr.bf16.mxu1 %v4704_v0 }
 0x233   :  { %4182 = vmatpush3.bf16.msra.mxu1 %v4828_v49 }
 0x234   :  { %4183 = vmatprep.subr.bf16.mxu1 %v4704_v0 }
 0x237   :  { %4185 = vmatpush3.bf16.msra.mxu1 %v4830_v50 }
 0x238   :  { %4186 = vmatprep.subr.bf16.mxu1 %v4704_v0 }
 0x23b   :  { %4188 = vmatpush3.bf16.msra.mxu1 %v4832_v51 }
 0x23c   :  { %4189 = vmatprep.subr.bf16.mxu1 %v4704_v0 }
 0x23e   :  { %3457 = vmatmul.mubr.f32.vlgmr.msra.gmra.mrb[0].mxu1 %v802_v9 }
 0x23f   :  { %4191 = vmatpush3.bf16.msra.mxu1 %v4886_v27  ;;  %3491 = vmatprep.mubr.msk.f32.mxu1 %vm4705_vm0, %v4706_v1 }
 0x240   :  { %4192 = vmatprep.subr.bf16.mxu1 %v4704_v0 }
 0x243   :  { %4194 = vmatpush3.bf16.msra.mxu1 %v4888_v28 }
 0x244   :  { %4195 = vmatprep.subr.bf16.mxu1 %v4704_v0 }
 0x247   :  { %4197 = vmatpush3.bf16.msra.mxu1 %v4890_v29 }
 0x248   :  { %4198 = vmatprep.subr.bf16.mxu1 %v4704_v0 }
 0x24b   :  { %4200 = vmatpush3.bf16.msra.mxu1 %v4893_v30 }
 0x24c   :  { %4201 = vmatprep.subr.bf16.mxu1 %v4704_v0 }
 0x24f   :  { %4203 = vmatpush3.bf16.msra.mxu1 %v4895_v33 }
 0x250   :  { %4204 = vmatprep.subr.bf16.mxu1 %v4704_v0 }
 0x253   :  { %4206 = vmatpush3.bf16.msra.mxu1 %v4897_v36 }
 0x254   :  { %4207 = vmatprep.subr.bf16.mxu1 %v4704_v0 }
 0x257   :  { %4209 = vmatpush3.bf16.msra.mxu1 %v4899_v37 }
 0x258   :  { %4210 = vmatprep.subr.bf16.mxu1 %v4704_v0 }
 0x25b   :  { %4212 = vmatpush3.bf16.msra.mxu1 %v4902_v38 }
 0x25c   :  { %4213 = vmatprep.subr.bf16.mxu1 %v4704_v0 }
 0x25e   :  { %3492 = vmatmul.mubr.f32.vlgmr.msra.gmra.mrb[0].mxu1 %v5193_v4 }
 0x25f   :  { %4215 = vmatpush3.bf16.msra.mxu1 %v4781_v12  ;;  %3526 = vmatprep.mubr.msk.f32.mxu1 %vm4705_vm0, %v4706_v1 }
 0x260   :  { %4216 = vmatprep.subr.bf16.mxu1 %v4704_v0 }
 0x263   :  { %4218 = vmatpush3.bf16.msra.mxu1 %v4784_v13 }
 0x264   :  { %4219 = vmatprep.subr.bf16.mxu1 %v4704_v0 }
 0x267   :  { %4221 = vmatpush3.bf16.msra.mxu1 %v4790_v18 }
 0x268   :  { %4222 = vmatprep.subr.bf16.mxu1 %v4704_v0 }
 0x26b   :  { %4224 = vmatpush3.bf16.msra.mxu1 %v4801_v32 }
 0x26c   :  { %4225 = vmatprep.subr.bf16.mxu1 %v4704_v0 }
 0x26f   :  { %4227 = vmatpush3.bf16.msra.mxu1 %v4817_v44 }
 0x270   :  { %4228 = vmatprep.subr.bf16.mxu1 %v4704_v0 }
 0x273   :  { %4230 = vmatpush3.bf16.msra.mxu1 %v4828_v49 }
 0x274   :  { %4231 = vmatprep.subr.bf16.mxu1 %v4704_v0 }
 0x277   :  { %4233 = vmatpush3.bf16.msra.mxu1 %v4830_v50 }
 0x278   :  { %4234 = vmatprep.subr.bf16.mxu1 %v4704_v0 }
 0x27b   :  { %4236 = vmatpush3.bf16.msra.mxu1 %v4832_v51 }
 0x27c   :  { %4381 = vmatprep.subr.bf16.mxu1 %v4704_v0 }
 0x27e   :  { %3527 = vmatmul.mubr.f32.vlgmr.msra.gmra.mrb[0].mxu1 %v5193_v4 }
 0x27f   :  { %4383 = vmatpush3.bf16.msra.mxu1 %v4781_v12  ;;  %3771 = vmatprep.mubr.msk.f32.mxu1 %vm4705_vm0, %v4706_v1 }
 0x280   :  { %4384 = vmatprep.subr.bf16.mxu1 %v4704_v0 }
 0x283   :  { %4386 = vmatpush3.bf16.msra.mxu1 %v4784_v13 }
 0x284   :  { %4387 = vmatprep.subr.bf16.mxu1 %v4704_v0 }
 0x287   :  { %4389 = vmatpush3.bf16.msra.mxu1 %v4790_v18 }
 0x288   :  { %4390 = vmatprep.subr.bf16.mxu1 %v4704_v0 }
 0x28b   :  { %4392 = vmatpush3.bf16.msra.mxu1 %v4801_v32 }
 0x28c   :  { %4393 = vmatprep.subr.bf16.mxu1 %v4704_v0 }
 0x28f   :  { %4395 = vmatpush3.bf16.msra.mxu1 %v4817_v44  ;;  %v2011_v22 = vpop.f32.mrb[2].mxu0 }
 0x290   :  { %v5301_v15 = vsub.f32 %v5073_v42, %v2011_v22  ;;  %v3738_v39 = vpop.f32.mrb[3].mxu0  ;;  %4396 = vmatprep.subr.bf16.mxu1 %v4704_v0 }
 0x292   :  { %v2016_v40 = vmul.f32 %v5301_v15, %v5301_v15 }
 0x293   :  { %4398 = vmatpush3.bf16.msra.mxu1 %v4828_v49 }
 0x294   :  { %v5307_v45 = vand.u32 4294901760, %v2016_v40  ;;  %4399 = vmatprep.subr.bf16.mxu1 %v4704_v0 }
 0x296   :  { %v2099_v46 = vsub.f32 %v2016_v40, %v5307_v45 }
 0x297   :  { %4401 = vmatpush3.bf16.msra.mxu1 %v4830_v50 }
 0x298   :  { %v2100_v19 = vand.u32 4294901760, %v2099_v46  ;;  %4402 = vmatprep.subr.bf16.mxu1 %v4704_v0 }
 0x29a   :  { %v2101_v53 = vsub.f32 %v2099_v46, %v2100_v19 }
 0x29b   :  { %4404 = vmatpush3.bf16.msra.mxu1 %v4832_v51 }
 0x29c   :  { %4405 = vmatprep.subr.bf16.mxu1 %v4704_v0  ;;  %v2102_v20 = vand.u32 4294901760, %v2101_v53 }
 0x29e   :  { %3772 = vmatmul.mubr.f32.vlgmr.msra.gmra.mrb[2].mxu1 %v2102_v20 }
 0x29f   :  { %4407 = vmatpush3.bf16.msra.mxu1 %v4908_v41  ;;  %3806 = vmatprep.mubr.msk.f32.mxu1 %vm4705_vm0, %v4706_v1 }
 0x2a0   :  { %4408 = vmatprep.subr.bf16.mxu1 %v4704_v0 }
 0x2a3   :  { %4410 = vmatpush3.bf16.msra.mxu1 %v4916_v57 }
 0x2a4   :  { %4411 = vmatprep.subr.bf16.mxu1 %v4704_v0 }
 0x2a7   :  { %4413 = vmatpush3.bf16.msra.mxu1 %v4923_v8 }
 0x2a8   :  { %4414 = vmatprep.subr.bf16.mxu1 %v4704_v0 }
 0x2ab   :  { %4416 = vmatpush3.bf16.msra.mxu1 %v4930_v16 }
 0x2ac   :  { %4417 = vmatprep.subr.bf16.mxu1 %v4704_v0 }
 0x2af   :  { %4419 = vmatpush3.bf16.msra.mxu1 %v4936_v17 }
 0x2b0   :  { %4420 = vmatprep.subr.bf16.mxu1 %v4704_v0 }
 0x2b3   :  { %4422 = vmatpush3.bf16.msra.mxu1 %v4942_v58 }
 0x2b4   :  { %4423 = vmatprep.subr.bf16.mxu1 %v4704_v0 }
 0x2b7   :  { %4425 = vmatpush3.bf16.msra.mxu1 %v4947_v6 }
 0x2b8   :  { %4426 = vmatprep.subr.bf16.mxu1 %v4704_v0 }
 0x2bb   :  { %4428 = vmatpush3.bf16.msra.mxu1 %v4951_v25 }
 0x2bc   :  { %4429 = vmatprep.subr.bf16.mxu1 %v4704_v0 }
 0x2be   :  { %3807 = vmatmul.mubr.f32.vlgmr.msra.gmra.mrb[2].mxu1 %v5307_v45 }
 0x2bf   :  { %4431 = vmatpush3.bf16.msra.mxu1 %v4957_v26  ;;  %3841 = vmatprep.mubr.msk.f32.mxu1 %vm4705_vm0, %v4706_v1 }
 0x2c0   :  { %4432 = vmatprep.subr.bf16.mxu1 %v4704_v0 }
 0x2c3   :  { %4434 = vmatpush3.bf16.msra.mxu1 %v4964_v10 }
 0x2c4   :  { %4435 = vmatprep.subr.bf16.mxu1 %v4704_v0 }
 0x2c7   :  { %4437 = vmatpush3.bf16.msra.mxu1 %v4972_v34 }
 0x2c8   :  { %4438 = vmatprep.subr.bf16.mxu1 %v4704_v0 }
 0x2cb   :  { %4440 = vmatpush3.bf16.msra.mxu1 %v4978_v35 }
 0x2cc   :  { %4441 = vmatprep.subr.bf16.mxu1 %v4704_v0 }
 0x2cf   :  { %4443 = vmatpush3.bf16.msra.mxu1 %v4984_v43 }
 0x2d0   :  { %4444 = vmatprep.subr.bf16.mxu1 %v4704_v0 }
 0x2d3   :  { %4446 = vmatpush3.bf16.msra.mxu1 %v4990_v47 }
 0x2d4   :  { %4447 = vmatprep.subr.bf16.mxu1 %v4704_v0 }
 0x2d7   :  { %4449 = vmatpush3.bf16.msra.mxu1 %v4996_v48 }
 0x2d8   :  { %4450 = vmatprep.subr.bf16.mxu1 %v4704_v0 }
 0x2db   :  { %4452 = vmatpush3.bf16.msra.mxu1 %v5002_v54 }
 0x2dc   :  { %4453 = vmatprep.subr.bf16.mxu1 %v4704_v0 }
 0x2de   :  { %3842 = vmatmul.mubr.f32.vlgmr.msra.gmra.mrb[2].mxu1 %v2099_v46 }
 0x2df   :  { %4455 = vmatpush3.bf16.msra.mxu1 %v4781_v12  ;;  %3876 = vmatprep.mubr.msk.f32.mxu1 %vm4705_vm0, %v4706_v1 }
 0x2e0   :  { %4456 = vmatprep.subr.bf16.mxu1 %v4704_v0 }
 0x2e3   :  { %4458 = vmatpush3.bf16.msra.mxu1 %v4784_v13 }
 0x2e4   :  { %4459 = vmatprep.subr.bf16.mxu1 %v4704_v0 }
 0x2e7   :  { %4461 = vmatpush3.bf16.msra.mxu1 %v4790_v18 }
 0x2e8   :  { %4462 = vmatprep.subr.bf16.mxu1 %v4704_v0 }
 0x2eb   :  { %4464 = vmatpush3.bf16.msra.mxu1 %v4801_v32 }
 0x2ec   :  { %4465 = vmatprep.subr.bf16.mxu1 %v4704_v0 }
 0x2ef   :  { %4467 = vmatpush3.bf16.msra.mxu1 %v4817_v44 }
 0x2f0   :  { %4468 = vmatprep.subr.bf16.mxu1 %v4704_v0 }
 0x2f3   :  { %4470 = vmatpush3.bf16.msra.mxu1 %v4828_v49 }
 0x2f4   :  { %4471 = vmatprep.subr.bf16.mxu1 %v4704_v0 }
 0x2f7   :  { %4473 = vmatpush3.bf16.msra.mxu1 %v4830_v50 }
 0x2f8   :  { %4474 = vmatprep.subr.bf16.mxu1 %v4704_v0 }
 0x2fb   :  { %4476 = vmatpush3.bf16.msra.mxu1 %v4832_v51 }
 0x2fc   :  { %4477 = vmatprep.subr.bf16.mxu1 %v4704_v0 }
 0x2fe   :  { %3877 = vmatmul.mubr.f32.vlgmr.msra.gmra.mrb[2].mxu1 %v2100_v19 }
 0x2ff   :  { %4479 = vmatpush3.bf16.msra.mxu1 %v4886_v27  ;;  %3911 = vmatprep.mubr.msk.f32.mxu1 %vm4705_vm0, %v4706_v1 }
 0x300   :  { %4480 = vmatprep.subr.bf16.mxu1 %v4704_v0 }
 0x303   :  { %4482 = vmatpush3.bf16.msra.mxu1 %v4888_v28 }
 0x304   :  { %4483 = vmatprep.subr.bf16.mxu1 %v4704_v0 }
 0x307   :  { %4485 = vmatpush3.bf16.msra.mxu1 %v4890_v29 }
 0x308   :  { %4486 = vmatprep.subr.bf16.mxu1 %v4704_v0 }
 0x30b   :  { %4488 = vmatpush3.bf16.msra.mxu1 %v4893_v30 }
 0x30c   :  { %4489 = vmatprep.subr.bf16.mxu1 %v4704_v0 }
 0x30f   :  { %4491 = vmatpush3.bf16.msra.mxu1 %v4895_v33 }
 0x310   :  { %4492 = vmatprep.subr.bf16.mxu1 %v4704_v0 }
 0x313   :  { %4494 = vmatpush3.bf16.msra.mxu1 %v4897_v36 }
 0x314   :  { %4495 = vmatprep.subr.bf16.mxu1 %v4704_v0 }
 0x317   :  { %4497 = vmatpush3.bf16.msra.mxu1 %v4899_v37 }
 0x318   :  { %4498 = vmatprep.subr.bf16.mxu1 %v4704_v0 }
 0x31b   :  { %4500 = vmatpush3.bf16.msra.mxu1 %v4902_v38 }
 0x31c   :  { %4501 = vmatprep.subr.bf16.mxu1 %v4704_v0 }
 0x31e   :  { %3912 = vmatmul.mubr.f32.vlgmr.msra.gmra.mrb[2].mxu1 %v5307_v45 }
 0x31f   :  { %4503 = vmatpush3.bf16.msra.mxu1 %v4781_v12  ;;  %3946 = vmatprep.mubr.msk.f32.mxu1 %vm4705_vm0, %v4706_v1  ;;  %v1362_v12 = vlaneseq }
 0x320   :  { %4504 = vmatprep.subr.bf16.mxu1 %v4704_v0 }
 0x323   :  { %4506 = vmatpush3.bf16.msra.mxu1 %v4784_v13 }
 0x324   :  { %4507 = vmatprep.subr.bf16.mxu1 %v4704_v0 }
 0x327   :  { %4509 = vmatpush3.bf16.msra.mxu1 %v4790_v18 }
 0x328   :  { %4510 = vmatprep.subr.bf16.mxu1 %v4704_v0 }
 0x32b   :  { %4512 = vmatpush3.bf16.msra.mxu1 %v4801_v32  ;;  %v1363_v32 = vshrl.u32 %v1362_v12, 7 }
 0x32c   :  { %4513 = vmatprep.subr.bf16.mxu1 %v4704_v0 }
 0x32d   :  { %v1369_v27 = vsub.s32 1, %v1363_v32 }
 0x32f   :  { %4515 = vmatpush3.bf16.msra.mxu1 %v4817_v44  ;;  %v1364_v44 = vsub.s32 0, %v1363_v32 }
 0x330   :  { %4516 = vmatprep.subr.bf16.mxu1 %v4704_v0 }
 0x333   :  { %4518 = vmatpush3.bf16.msra.mxu1 %v4828_v49  ;;  %v74_v49 = vld [vmem:[%s5438_s2] sm:$0xf] }
 0x334   :  { %4519 = vmatprep.subr.bf16.mxu1 %v4704_v0  ;;  %v1365_v28 = vrot.slane %v74_v49, %v1364_v44  ;;  %v1370_v29 = vrot.slane %v74_v49, %v1369_v27 }
 0x337   :  { %4521 = vmatpush3.bf16.msra.mxu1 %v4830_v50 }
 0x338   :  { %4522 = vmatprep.subr.bf16.mxu1 %v4704_v0 }
 0x33b   :  { %4524 = vmatpush3.bf16.msra.mxu1 %v4832_v51 }
 0x33e   :  { %3947 = vmatmul.mubr.f32.vlgmr.msra.gmra.mrb[2].mxu1 %v5307_v45 }
 0x351   :  { %v1356_v1 = vpop.f32.mrb[0].mxu1 }
 0x352   :  { %v4525_v13 = vadd.f32 1e-05, %v1356_v1  ;;  %v3528_v18 = vpop.f32.mrb[1].mxu1 }
 0x354   :  { %4577 = vrsqrt.f32 %v4525_v13 }
 0x35e   :  { %v4578_v50 = vpop.eup %4577 }
 0x35f   :  { %v1361_v0 = vmul.f32 %v4578_v50, %v5189_v63 }
 0x361   :  { %v1366_v51 = vmul.f32 %v1365_v28, %v1361_v0 }
 0x363   :  { %v1371_v30 = vadd.f32 %v1370_v29, %v1366_v51 }
 0x365   :  { %1372 = vst [vmem:[#allocation8] sm:$0xf] %v1371_v30 }
 0x366   :  { %4658 = shalt.err (!%p4655_p0)
}
 0x367   :  { %s4659_s9 = scalar_lea.hbm %s5440_s4, 64 }
 0x368   :  { %p4660_p1 = scmp.ne.s32.totalorder %s5440_s4, %s4659_s9  ;;  %p4663_p2 = scmp.lt.u32.totalorder %s4659_s9, %s5440_s4 }
 0x36a   :  { %p4665_p3 = pnand %p4663_p2, %p4660_p1 }
 0x36c   :  { %4668 = shalt.err (!%p4665_p3)
}
 0x36d   :  { %2680 = dma.vmem_to_hbm [thread:$0]  %s2678_s6, 64, %s5440_s4, [#allocation4]   ;;  %v2662_v38 = vsub.s32 2, %v1363_v32  ;;  %v2667_v41 = vsub.s32 3, %v1363_v32 }
 0x36e   :  { %s4708_s15 = smov [#allocation9]  }
 0x36f   :  { %v2663_v57 = vrot.slane %v74_v49, %v2662_v38  ;;  %v2668_v17 = vrot.slane %v74_v49, %v2667_v41  ;;  %s2687_s16 = sshll.u32 %s4708_s15, 4  ;;  %s2688_s16 = int_to_ptr.vmem [resolvable:$true] %s2687_s16 }
 0x370   :  { %s4669_s17 = scalar_lea.vmem %s2688_s16, 64  ;;  %p4674_p5 = scmp.lt.s32.totalorder %s2688_s16, %s2688_s16 }
 0x371   :  { %p4670_p4 = scmp.ne.s32.totalorder %s2688_s16, %s4669_s17  ;;  %p4675_p6 = scmp.lt.s32.totalorder %s4669_s17, %s4669_s17 }
 0x373   :  { %p4676_p7 = por %p4675_p6, %p4674_p5 }
 0x375   :  { %p4677_p8 = pnand %p4676_p7, %p4670_p4 }
 0x411   :  { %v2654_v33 = vpop.f32.mrb[2].mxu1 }
 0x412   :  { %v4526_v36 = vadd.f32 1e-05, %v2654_v33  ;;  %v3948_v37 = vpop.f32.mrb[3].mxu1 }
 0x414   :  { %4579 = vrsqrt.f32 %v4526_v36 }
 0x41e   :  { %v4580_v8 = vpop.eup %4579 }
 0x41f   :  { %v2659_v16 = vmul.f32 %v4580_v8, %v5301_v15 }
 0x421   :  { %v2664_v56 = vmul.f32 %v2663_v57, %v2659_v16 }
 0x423   :  { %v2669_v58 = vadd.f32 %v2668_v17, %v2664_v56 }
 0x425   :  { %2670 = vst [vmem:[#allocation9] sm:$0xf] %v2669_v58 }
 0x426   :  { %4680 = shalt.err (!%p4677_p8)
}
 0x427   :  { %s4681_s19 = scalar_lea.hbm %s5441_s5, 64 }
 0x428   :  { %p4682_p9 = scmp.ne.s32.totalorder %s5441_s5, %s4681_s19  ;;  %p4685_p10 = scmp.lt.u32.totalorder %s4681_s19, %s5441_s5 }
 0x42a   :  { %p4687_p11 = pnand %p4685_p10, %p4682_p9 }
 0x42c   :  { %4690 = shalt.err (!%p4687_p11)
}
 0x42d   :  { %2690 = dma.vmem_to_hbm [thread:$0]  %s2688_s16, 64, %s5441_s5, [#allocation10]  }
 0x42e   :  { %4695 = dma.done.wait [#allocation4], 64  }
 0x42f   :  { %4696 = vsyncadd [#allocation4], 4294967232 }
 0x430   :  { %4697 = dma.done.wait [#allocation10], 64  }
 0x431   :  { %4698 = vsyncadd [#allocation10], 4294967232 }
 0x432   :  { %2697 = vsyncpa [#allocation3], 1 }
 0x433   :  { %2698 = vsyncpa [#allocation6], 1 }
 0x434   :  { %2699 = vsyncpa [#allocation4], 1 }
 0x435   :  { %2700 = vsyncpa [#allocation10], 1 }

</bundles_post_ra>
